<compile_context>
chip_gen: v7x
topology: tpu7x:2x2x1
jax: 0.10.0
libtpu: 0.0.40
codegen_flags: <defaults>
</compile_context>

<pallas_src>
import jax
import jax.numpy as jnp
from jax.experimental import pallas as pl
from jax.experimental.pallas import tpu as pltpu

IN_FEATURES = 384
OUT_FEATURES = 384  # square so that the `v1 + x1` residual is well-defined


def _fused_linear_add_relu_kernel(x_ref, wt_ref, o_ref):
    # x_ref:  (TM, K) f32 input tile
    # wt_ref: (K, N)  bf16 pre-transposed weight (W.T), constant across M tiles
    # o_ref:  (TM, N) f32 output tile
    x = x_ref[...]
    v1 = jnp.dot(
        x.astype(jnp.bfloat16),              # bf16 MXU inputs
        wt_ref[...],
        preferred_element_type=jnp.float32,  # f32 accumulate
    )
    v2 = v1 + x                              # residual add in f32
    o_ref[...] = jnp.maximum(v2, 0.0).astype(o_ref.dtype)


def _pick_tm(M):
    """Row-tile size.

    M <= 8  -> single full-array block (block dim == array dim is legal).
    M >  8  -> rows a multiple of 8 (full-vreg stores), capped at 1024
               (double-buffered x+out ~ 12 MiB, fits scoped VMEM on every
               generation incl. v7x), and sized so the grid has >= 2 steps
               (second TensorCore on v7x via "parallel" semantics).
    """
    if M <= 8:
        return M
    half = pl.cdiv(M, 2)
    return min(1024, ((half + 7) // 8) * 8)


def fused_linear_add_relu(x, w_t):
    """relu(x @ w_t + x) in a single Pallas TPU kernel.

    x   : (M, K) float32
    w_t : (K, N) bfloat16   (PyTorch Linear weight, transposed, pre-cast)
    """
    M, K = x.shape
    Kw, N = w_t.shape
    assert K == Kw and K == N, "residual add requires a square projection"

    tm = _pick_tm(M)
    grid_m = pl.cdiv(M, tm)

    return pl.pallas_call(
        _fused_linear_add_relu_kernel,
        out_shape=jax.ShapeDtypeStruct((M, N), x.dtype),
        grid_spec=pltpu.PrefetchScalarGridSpec(
            num_scalar_prefetch=0,
            grid=(grid_m,),
            in_specs=[
                # Row tile of x; ragged last block handled by Pallas (masked).
                pl.BlockSpec((tm, K), lambda i: (i, 0)),
                # Whole weight, constant index map -> fetched once; no second
                # pipeline buffer needed.
                pl.BlockSpec((K, N), lambda i: (0, 0),
                             pipeline_mode=pl.Buffered(1)),
            ],
            out_specs=pl.BlockSpec((tm, N), lambda i: (i, 0)),
        ),
        compiler_params=pltpu.CompilerParams(
            # Independent M tiles -> megacore / second TC on v7x.
            dimension_semantics=("parallel",),
        ),
        cost_estimate=pl.CostEstimate(
            flops=2 * M * K * N,
            bytes_accessed=M * K * 4 + K * N * 2 + M * N * 4,
            transcendentals=0,
        ),
    )(x, w_t)


class Model:
    """JAX/Pallas port of the PyTorch Model: relu(linear(x) + x), zero weight."""

    def __init__(self):
        # PyTorch Linear stores weight as (out_features, in_features); keep the
        # transposed copy (in_features, out_features), pre-cast to bf16 so the
        # per-call weight DMA is half the bytes.
        w = jnp.zeros((OUT_FEATURES, IN_FEATURES), dtype=jnp.float32)
        self.w_t = jnp.asarray(w.T).astype(jnp.bfloat16)  # (K, N) bf16

    def __call__(self, x1):
        return fused_linear_add_relu(x1, self.w_t)


def _reference(x, w_t):
    # Same bf16-matmul / f32-accumulate path as the kernel.
    return jnp.maximum(
        jnp.dot(x.astype(jnp.bfloat16), w_t, preferred_element_type=jnp.float32)
        + x,
        0.0,
    )


if __name__ == "__main__":
    key = jax.random.PRNGKey(0)
    model = Model()

    # Matches the module's example input x1 = torch.randn(1, 384).
    x1 = jax.random.normal(key, (1, IN_FEATURES), dtype=jnp.float32)
    out = jax.block_until_ready(model(x1))
    assert out.shape == (1, OUT_FEATURES)
    assert jnp.allclose(out, _reference(x1, model.w_t), atol=1e-5, rtol=1e-5)

    # Small multi-tile / ragged-tail check (M=20 -> tm=16, grid=2, tail=4 rows).
    x_big = jax.random.normal(jax.random.PRNGKey(1), (20, IN_FEATURES),
                              dtype=jnp.float32)
    out_big = jax.block_until_ready(model(x_big))
    assert out_big.shape == (20, OUT_FEATURES)
    assert jnp.allclose(out_big, _reference(x_big, model.w_t),
                        atol=1e-5, rtol=1e-5)

    print("KERNEL_OK")
</pallas_src>

<mosaic_0001>
module attributes {stable_mosaic.version = 11 : i64} {
  func.func @_fused_linear_add_relu_kernel(%arg0: i32, %arg1: memref<1x384xf32, #tpu.memory_space<vmem>>, %arg2: memref<384x384xbf16, #tpu.memory_space<vmem>>, %arg3: memref<1x384xf32, #tpu.memory_space<vmem>>) attributes {dimension_semantics = [#tpu.dimension_semantics<parallel>], iteration_bounds = array<i64: 1>, scalar_prefetch = 0 : i64, scratch_operands = 0 : i64, tpu.core_type = #tpu.core_type<tc>, window_params = [{transform_indices = @transform_0, window_bounds = array<i64: 1, 384>}, {pipeline_mode = #tpu.pipeline_mode<synchronous>, transform_indices = @transform_1, window_bounds = array<i64: 384, 384>}, {transform_indices = @transform_2, window_bounds = array<i64: 1, 384>}]} {
    %c0 = arith.constant 0 : index
    %c0_0 = arith.constant 0 : index
    %0 = vector.load %arg1[%c0, %c0_0] : memref<1x384xf32, #tpu.memory_space<vmem>>, vector<1x384xf32>
    %1 = arith.truncf %0 : vector<1x384xf32> to vector<1x384xbf16>
    %c0_1 = arith.constant 0 : index
    %c0_2 = arith.constant 0 : index
    %2 = vector.load %arg2[%c0_1, %c0_2] : memref<384x384xbf16, #tpu.memory_space<vmem>>, vector<384x384xbf16>
    %cst = arith.constant dense<0.000000e+00> : vector<1x384xf32>
    %3 = tpu.matmul %1, %2, %cst {dimension_numbers = #tpu.dot_dimension_numbers<[1], [0], [0], [1], [0, 0, 1, 1], [], []>} : vector<1x384xbf16>, vector<384x384xbf16>, vector<1x384xf32> -> vector<1x384xf32>
    %4 = arith.addf %3, %0 : vector<1x384xf32>
    %cst_3 = arith.constant 0.000000e+00 : f32
    %5 = vector.broadcast %cst_3 : f32 to vector<1x384xf32>
    %6 = arith.maximumf %4, %5 : vector<1x384xf32>
    %c0_4 = arith.constant 0 : index
    %c0_5 = arith.constant 0 : index
    %7 = vector.load %arg3[%c0_4, %c0_5] : memref<1x384xf32, #tpu.memory_space<vmem>>, vector<1x384xf32>
    tpu.vector_store %arg3[%c0_4, %c0_5], %6 {strides = array<i32>} : memref<1x384xf32, #tpu.memory_space<vmem>>, vector<1x384xf32>,
    return
  }
  func.func @transform_0(%arg0: i32) -> (i32, i32) {
    %c0_i32 = arith.constant 0 : i32
    %c0_i32_0 = arith.constant 0 : i32
    return %arg0, %c0_i32 : i32, i32
  }
  func.func @transform_1(%arg0: i32) -> (i32, i32) {
    %c0_i32 = arith.constant 0 : i32
    %c0_i32_0 = arith.constant 0 : i32
    %c0_i32_1 = arith.constant 0 : i32
    return %c0_i32, %c0_i32_0 : i32, i32
  }
  func.func @transform_2(%arg0: i32) -> (i32, i32) {
    %c0_i32 = arith.constant 0 : i32
    %c0_i32_0 = arith.constant 0 : i32
    return %arg0, %c0_i32 : i32, i32
  }
}

</mosaic_0001>

<bundles_post_ra>
// kernel: tpu_custom_call.1
= control target key start
LH: loop header
LB: loop body
LE: loop exit
PB: predicated region body
PF: predicated region fallthrough
CT: control target
= control target key end

     0   :  { %7 = vsyncpa [#allocation3], 0  ;;  %s1152_s0 = inlined_call_operand.hbm [shape: f32[1,384], index: 0, kind: input, shape index: {}]   ;;  %s1153_s1 = inlined_call_operand.hbm [shape: bf16[384,384], index: 1, kind: input, shape index: {}]   ;;  %s1154_s2 = inlined_call_operand.hbm [shape: f32[1,384], index: 2, kind: output, shape index: {}]  }
   0x1   :  { %8 = vsyncpa [#allocation6], 0 }
   0x2   :  { %9 = vsyncpa [#allocation4], 0  ;;  %s1058_s9 = smov [#allocation2]   ;;  %s1059_s11 = smov [#allocation5]  }
   0x3   :  { %s16_s10 = sshll.u32 %s1058_s9, 4  ;;  %s25_s12 = sshll.u32 %s1059_s11, 4  ;;  %s17_s10 = int_to_ptr.vmem [resolvable:$true] %s16_s10  ;;  %s1082_s12 = int_to_ptr.vmem [resolvable:$true] %s25_s12 }
   0x4   :  { %s986_s15 = scalar_lea.hbm %s1152_s0, 48 }
   0x5   :  { %p987_p0 = scmp.ne.s32.totalorder %s1152_s0, %s986_s15  ;;  %p990_p1 = scmp.lt.u32.totalorder %s986_s15, %s1152_s0 }
   0x7   :  { %p992_p2 = pnand %p990_p1, %p987_p0 }
   0x9   :  { %995 = shalt.err (!%p992_p2)
}
   0xa   :  { %s996_s20 = scalar_lea.vmem %s17_s10, 48  ;;  %s1000_s21 = scalar_lea.vmem %s17_s10, 64 }
   0xb   :  { %p997_p3 = scmp.ne.s32.totalorder %s17_s10, %s996_s20  ;;  %p1001_p4 = scmp.lt.s32.totalorder %s17_s10, %s17_s10 }
   0xc   :  { %p1002_p5 = scmp.lt.s32.totalorder %s1000_s21, %s996_s20 }
   0xe   :  { %p1003_p6 = por %p1002_p5, %p1001_p4 }
  0x10   :  { %p1004_p7 = pnand %p1003_p6, %p997_p3 }
  0x12   :  { %1007 = shalt.err (!%p1004_p7)
}
  0x13   :  { %19 = dma.hbm_to_vmem [thread:$0]  %s1152_s0, 48, %s17_s10, [#allocation3]  }
  0x14   :  { %s1008_s26 = scalar_lea.hbm %s1153_s1, 9216 }
  0x15   :  { %p1009_p8 = scmp.ne.s32.totalorder %s1153_s1, %s1008_s26  ;;  %p1012_p9 = scmp.lt.u32.totalorder %s1008_s26, %s1153_s1 }
  0x17   :  { %p1014_p10 = pnand %p1012_p9, %p1009_p8 }
  0x19   :  { %1017 = shalt.err (!%p1014_p10)
}
  0x1a   :  { %s1018_s3 = scalar_lea.vmem %s1082_s12, 9216  ;;  %p1023_p12 = scmp.lt.s32.totalorder %s1082_s12, %s1082_s12 }
  0x1b   :  { %p1019_p11 = scmp.ne.s32.totalorder %s1082_s12, %s1018_s3  ;;  %p1024_p13 = scmp.lt.s32.totalorder %s1018_s3, %s1018_s3 }
  0x1d   :  { %p1025_p0 = por %p1024_p13, %p1023_p12 }
  0x1f   :  { %p1026_p1 = pnand %p1025_p0, %p1019_p11 }
  0x21   :  { %1029 = shalt.err (!%p1026_p1)
}
  0x22   :  { %s1060_s0 = smov 192   ;;  %s1061_s4 = smov 12  }
  0x23   :  { %31 = dma.hbm_to_vmem [thread:$0]  %s1153_s1, 9216, %s1082_s12, [#allocation6], %s1060_s0, %s1060_s0, %s1061_s4  }
  0x24   :  { %1052 = dma.done.wait [#allocation3], 48  }
  0x25   :  { %1053 = vsyncadd [#allocation3], 4294967248 }
  0x26   :  { %1054 = dma.done.wait [#allocation6], 9216  }
  0x27   :  { %1055 = vsyncadd [#allocation6], 4294958080  ;;  %v890_v0 = vld [vmem:[#allocation5 + $0x4] ss:$12 sps:$4 sm:$0xff]   ;;  %v892_v1 = vld [vmem:[#allocation5] ss:$12 sps:$4 sm:$0xff]   ;;  %v41_v21 = vlaneseq }
  0x28   :  { %539 = vmatprep.subr.bf16.mxu0 %v890_v0  ;;  %v893_v2 = vld [vmem:[#allocation5 + $0x1c] ss:$12 sps:$4 sm:$0xff]   ;;  %v895_v3 = vld [vmem:[#allocation5 + $0x18] ss:$12 sps:$4 sm:$0xff]   ;;  %v896_v4 = vld [vmem:[#allocation5 + $0x34] ss:$12 sps:$4 sm:$0xff]  }
  0x29   :  { %540 = vmatpush1.bf16.msra.mxu0 %v892_v1  ;;  %v898_v5 = vld [vmem:[#allocation5 + $0xc8] ss:$12 sps:$4 sm:$0xff]   ;;  %v899_v7 = vld [vmem:[#allocation5 + $0x30] ss:$12 sps:$4 sm:$0xff]   ;;  %v903_v8 = vld [vmem:[#allocation5 + $0xe0] ss:$12 sps:$4 sm:$0xff]  }
  0x2a   :  { %541 = vmatprep.subr.bf16.mxu0 %v893_v2  ;;  %v900_v6 = vld [vmem:[#allocation5 + $0x8] ss:$12 sps:$4 sm:$0xff]   ;;  %824 = vmatprep.subr.bf16.mxu1 %v898_v5  ;;  %v901_v9 = vld [vmem:[#allocation5 + $0x4c] ss:$12 sps:$4 sm:$0xff]   ;;  %v906_v12 = vld [vmem:[#allocation5 + $0x64] ss:$12 sps:$4 sm:$0xff]  }
  0x2b   :  { %825 = vmatpush3.bf16.msra.mxu1 %v900_v6  ;;  %v905_v10 = vld [vmem:[#allocation5 + $0x20] ss:$12 sps:$4 sm:$0xff]   ;;  %v904_v11 = vld [vmem:[#allocation5 + $0x48] ss:$12 sps:$4 sm:$0xff]   ;;  %v908_v13 = vld [vmem:[#allocation5 + $0xf8] ss:$12 sps:$4 sm:$0xff]  }
  0x2c   :  { %826 = vmatprep.subr.bf16.mxu1 %v903_v8  ;;  %v910_v14 = vld [vmem:[#allocation5 + $0x38] ss:$12 sps:$4 sm:$0xff]   ;;  %v909_v15 = vld [vmem:[#allocation5 + $0x60] ss:$12 sps:$4 sm:$0xff]   ;;  %v913_v16 = vld [vmem:[#allocation5 + $0x110] ss:$12 sps:$4 sm:$0xff]  }
  0x2d   :  { %542 = vmatpush1.bf16.msra.mxu0 %v895_v3  ;;  %v915_v17 = vld [vmem:[#allocation5 + $0x50] ss:$12 sps:$4 sm:$0xff]   ;;  %v918_v19 = vld [vmem:[#allocation5 + $0x128] ss:$12 sps:$4 sm:$0xff]   ;;  %v914_v20 = vld [vmem:[#allocation5 + $0x78] ss:$12 sps:$4 sm:$0xff]  }
  0x2e   :  { %543 = vmatprep.subr.bf16.mxu0 %v896_v4  ;;  %v911_v18 = vld [vmem:[#allocation5 + $0x7c] ss:$12 sps:$4 sm:$0xff]   ;;  %v916_v23 = vld [vmem:[#allocation5 + $0x94] ss:$12 sps:$4 sm:$0xff]   ;;  %v1114_v26 = vshrl.u32 %v41_v21, 7  ;;  %v1062_v47 = vmov 0.0  }
  0x2f   :  { %827 = vmatpush3.bf16.msra.mxu1 %v905_v10  ;;  %v920_v22 = vld [vmem:[#allocation5 + $0x68] ss:$12 sps:$4 sm:$0xff]   ;;  %v923_v24 = vld [vmem:[#allocation5 + $0x140] ss:$12 sps:$4 sm:$0xff]   ;;  %v919_v25 = vld [vmem:[#allocation5 + $0x90] ss:$12 sps:$4 sm:$0xff]  }
  0x30   :  { %828 = vmatprep.subr.bf16.mxu1 %v908_v13  ;;  %v925_v27 = vld [vmem:[#allocation5 + $0x80] ss:$12 sps:$4 sm:$0xff]   ;;  %v928_v29 = vld [vmem:[#allocation5 + $0x158] ss:$12 sps:$4 sm:$0xff]   ;;  %v924_v30 = vld [vmem:[#allocation5 + $0xa8] ss:$12 sps:$4 sm:$0xff]  }
  0x31   :  { %544 = vmatpush1.bf16.msra.mxu0 %v899_v7  ;;  %v921_v28 = vld [vmem:[#allocation5 + $0xac] ss:$12 sps:$4 sm:$0xff]   ;;  %v926_v31 = vld [vmem:[#allocation5 + $0xc4] ss:$12 sps:$4 sm:$0xff]   ;;  %v47_v32 = vsub.s32 1, %v1114_v26  ;;  %v43_v33 = vsub.s32 0, %v1114_v26 }
  0x32   :  { %545 = vmatprep.subr.bf16.mxu0 %v901_v9  ;;  %v930_v34 = vld [vmem:[#allocation5 + $0x98] ss:$12 sps:$4 sm:$0xff]   ;;  %v933_v35 = vld [vmem:[#allocation5 + $0x170] ss:$12 sps:$4 sm:$0xff]   ;;  %v929_v36 = vld [vmem:[#allocation5 + $0xc0] ss:$12 sps:$4 sm:$0xff]  }
  0x33   :  { %829 = vmatpush3.bf16.msra.mxu1 %v910_v14  ;;  %v1118_v37 = vld [vmem:[#allocation2] sm:$0x7]  ;;  %v934_v44 = vld [vmem:[#allocation5 + $0xd8] ss:$12 sps:$4 sm:$0xff]   ;;  %v939_v45 = vld [vmem:[#allocation5 + $0x188] ss:$12 sps:$4 sm:$0xff]  }
  0x34   :  { %830 = vmatprep.subr.bf16.mxu1 %v913_v16  ;;  %v935_v38 = vld [vmem:[#allocation5 + $0xb0] ss:$12 sps:$4 sm:$0xff]   ;;  %v1121_v39 = vrot.slane %v1118_v37, %v47_v32  ;;  %v1124_v40 = vrot.slane %v1118_v37, %v43_v33  ;;  %v936_v46 = vld [vmem:[#allocation5 + $0xf4] ss:$12 sps:$4 sm:$0xff]   ;;  %v940_v50 = vld [vmem:[#allocation5 + $0x10c] ss:$12 sps:$4 sm:$0xff]  }
  0x35   :  { %546 = vmatpush1.bf16.msra.mxu0 %v904_v11  ;;  %v931_v41 = vld [vmem:[#allocation5 + $0xdc] ss:$12 sps:$4 sm:$0xff]   ;;  %v943_v49 = vld [vmem:[#allocation5 + $0x1a0] ss:$12 sps:$4 sm:$0xff]   ;;  %vm1063_vm0 = vmmov 0   ;;  %v51_v63 = vsub.s32 2, %v1114_v26 }
  0x36   :  { %547 = vmatprep.subr.bf16.mxu0 %v906_v12  ;;  %v57_v42 = vpack.c.bf16 %v1121_v39, %v1121_v39  ;;  %v1130_v43 = vpack.c.bf16 %v1124_v40, %v1124_v40  ;;  %v938_v48 = vld [vmem:[#allocation5 + $0xf0] ss:$12 sps:$4 sm:$0xff]   ;;  %v942_v51 = vld [vmem:[#allocation5 + $0x108] ss:$12 sps:$4 sm:$0xff]   ;;  %v947_v52 = vld [vmem:[#allocation5 + $0x1b8] ss:$12 sps:$4 sm:$0xff]  }
  0x37   :  { %831 = vmatpush3.bf16.msra.mxu1 %v915_v17  ;;  %v944_v53 = vld [vmem:[#allocation5 + $0x124] ss:$12 sps:$4 sm:$0xff]   ;;  %v946_v54 = vld [vmem:[#allocation5 + $0x120] ss:$12 sps:$4 sm:$0xff]   ;;  %v948_v56 = vld [vmem:[#allocation5 + $0x13c] ss:$12 sps:$4 sm:$0xff]   ;;  %v52_v3 = vrot.slane %v1118_v37, %v51_v63 }
  0x38   :  { %832 = vmatprep.subr.bf16.mxu1 %v918_v19  ;;  %653 = vmatprep.mubr.bf16.mxu1 %v57_v42  ;;  %v951_v55 = vld [vmem:[#allocation5 + $0x1d0] ss:$12 sps:$4 sm:$0xff]   ;;  %v950_v57 = vld [vmem:[#allocation5 + $0x138] ss:$12 sps:$4 sm:$0xff]   ;;  %v955_v58 = vld [vmem:[#allocation5 + $0x1e8] ss:$12 sps:$4 sm:$0xff]  }
  0x39   :  { %548 = vmatpush1.bf16.msra.mxu0 %v909_v15  ;;  %571 = vmatprep.mubr.bf16.mxu0 %v57_v42  ;;  %v952_v59 = vld [vmem:[#allocation5 + $0x154] ss:$12 sps:$4 sm:$0xff]   ;;  %v954_v60 = vld [vmem:[#allocation5 + $0x150] ss:$12 sps:$4 sm:$0xff]   ;;  %v956_v62 = vld [vmem:[#allocation5 + $0x16c] ss:$12 sps:$4 sm:$0xff]   ;;  %v58_v7 = vpack.c.bf16 %v52_v3, %v52_v3 }
  0x3a   :  { %549 = vmatprep.subr.bf16.mxu0 %v911_v18  ;;  %v959_v61 = vld [vmem:[#allocation5 + $0x200] ss:$12 sps:$4 sm:$0xff]   ;;  %v958_v0 = vld [vmem:[#allocation5 + $0x168] ss:$12 sps:$4 sm:$0xff]   ;;  %v963_v1 = vld [vmem:[#allocation5 + $0x218] ss:$12 sps:$4 sm:$0xff]  }
  0x3b   :  { %833 = vmatpush3.bf16.msra.mxu1 %v920_v22  ;;  %v962_v2 = vld [vmem:[#allocation5 + $0x184] ss:$12 sps:$4 sm:$0xff]   ;;  %v960_v4 = vld [vmem:[#allocation5 + $0x180] ss:$12 sps:$4 sm:$0xff]   ;;  %v966_v6 = vld [vmem:[#allocation5 + $0x19c] ss:$12 sps:$4 sm:$0xff]  }
  0x3c   :  { %834 = vmatprep.subr.bf16.mxu1 %v923_v24  ;;  %v967_v5 = vld [vmem:[#allocation5 + $0x230] ss:$12 sps:$4 sm:$0xff]   ;;  %v964_v8 = vld [vmem:[#allocation5 + $0x198] ss:$12 sps:$4 sm:$0xff]   ;;  %v970_v9 = vld [vmem:[#allocation5 + $0x1b4] ss:$12 sps:$4 sm:$0xff]  }
  0x3d   :  { %550 = vmatpush1.bf16.msra.mxu0 %v914_v20  ;;  %v1064_v10 = vmov 0   ;;  %v968_v11 = vld [vmem:[#allocation5 + $0x1b0] ss:$12 sps:$4 sm:$0xff]   ;;  %v973_v12 = vld [vmem:[#allocation5 + $0x1cc] ss:$12 sps:$4 sm:$0xff]   ;;  %s1066_s1 = smov [#allocation7]  }
  0x3e   :  { %551 = vmatprep.subr.bf16.mxu0 %v916_v23  ;;  %v971_v13 = vld [vmem:[#allocation5 + $0x1c8] ss:$12 sps:$4 sm:$0xff]   ;;  %v976_v14 = vld [vmem:[#allocation5 + $0x1e4] ss:$12 sps:$4 sm:$0xff]   ;;  %v974_v15 = vld [vmem:[#allocation5 + $0x1e0] ss:$12 sps:$4 sm:$0xff]  }
  0x3f   :  { %835 = vmatpush3.bf16.msra.mxu1 %v925_v27  ;;  %v979_v16 = vld [vmem:[#allocation5 + $0x1fc] ss:$12 sps:$4 sm:$0xff]   ;;  %v977_v17 = vld [vmem:[#allocation5 + $0x1f8] ss:$12 sps:$4 sm:$0xff]   ;;  %v982_v18 = vld [vmem:[#allocation5 + $0x214] ss:$12 sps:$4 sm:$0xff]  }
  0x40   :  { %836 = vmatprep.subr.bf16.mxu1 %v928_v29  ;;  %v980_v19 = vld [vmem:[#allocation5 + $0x210] ss:$12 sps:$4 sm:$0xff]   ;;  %v985_v20 = vld [vmem:[#allocation5 + $0x22c] ss:$12 sps:$4 sm:$0xff]   ;;  %v983_v22 = vld [vmem:[#allocation5 + $0x228] ss:$12 sps:$4 sm:$0xff]  }
  0x41   :  { %552 = vmatpush1.bf16.msra.mxu0 %v919_v25  ;;  %s742_s7 = sshll.u32 %s1066_s1, 4  ;;  %vm733_vm1 = vcmp.lt.s32.totalorder %v41_v21, 384  ;;  %s743_s7 = int_to_ptr.vmem [resolvable:$true] %s742_s7 }
  0x42   :  { %553 = vmatprep.subr.bf16.mxu0 %v921_v28  ;;  %s1030_s8 = scalar_lea.vmem %s743_s7, 48  ;;  %s1034_s9 = scalar_lea.vmem %s743_s7, 64 }
  0x43   :  { %837 = vmatpush3.bf16.msra.mxu1 %v930_v34  ;;  %p1031_p2 = scmp.ne.s32.totalorder %s743_s7, %s1030_s8  ;;  %p1035_p3 = scmp.lt.s32.totalorder %s743_s7, %s743_s7 }
  0x44   :  { %838 = vmatprep.subr.bf16.mxu1 %v933_v35  ;;  %v1065_v35 = vmov 1966171168   ;;  %p1036_p4 = scmp.lt.s32.totalorder %s1034_s9, %s1030_s8 }
  0x45   :  { %554 = vmatpush1.bf16.msra.mxu0 %v924_v30 }
  0x46   :  { %555 = vmatprep.subr.bf16.mxu0 %v926_v31  ;;  %p1037_p5 = por %p1036_p4, %p1035_p3 }
  0x47   :  { %839 = vmatpush3.bf16.msra.mxu1 %v935_v38 }
  0x48   :  { %855 = vmatprep.subr.bf16.mxu1 %v1062_v47  ;;  %p1038_p6 = pnand %p1037_p5, %p1031_p2 }
  0x49   :  { %556 = vmatpush1.bf16.msra.mxu0 %v929_v36  ;;  %v709_v36 = vunpack.c.l.s4 %v1065_v35 }
  0x4a   :  { %557 = vmatprep.subr.bf16.mxu0 %v931_v41  ;;  %654 = vmatmul.mubr.bf16.vlgmr.msra.gmra.mrb[0].mxu1 %v1130_v43 }
  0x4b   :  { %856 = vmatpush3.bf16.msra.mxu1 %v939_v45  ;;  %871 = vmatprep.mubr.msk.bf16.mxu1 %vm1063_vm0, %v1062_v47  ;;  %v710_v37 = vunpack.c.0.s8 %v709_v36 }
  0x4c   :  { %857 = vmatprep.subr.bf16.mxu1 %v1062_v47 }
  0x4d   :  { %558 = vmatpush1.bf16.msra.mxu0 %v934_v44 }
  0x4e   :  { %559 = vmatprep.subr.bf16.mxu0 %v936_v46 }
  0x4f   :  { %858 = vmatpush3.bf16.msra.mxu1 %v943_v49 }
  0x50   :  { %859 = vmatprep.subr.bf16.mxu1 %v1062_v47 }
  0x51   :  { %560 = vmatpush1.bf16.msra.mxu0 %v938_v48  ;;  %v713_v48 = vsub.s32 %v710_v37, %v1114_v26 }
  0x52   :  { %561 = vmatprep.subr.bf16.mxu0 %v940_v50 }
  0x53   :  { %860 = vmatpush3.bf16.msra.mxu1 %v947_v52 }
  0x54   :  { %861 = vmatprep.subr.bf16.mxu1 %v1062_v47 }
  0x55   :  { %562 = vmatpush1.bf16.msra.mxu0 %v942_v51 }
  0x56   :  { %563 = vmatprep.subr.bf16.mxu0 %v944_v53 }
  0x57   :  { %862 = vmatpush3.bf16.msra.mxu1 %v951_v55 }
  0x58   :  { %863 = vmatprep.subr.bf16.mxu1 %v1062_v47 }
  0x59   :  { %564 = vmatpush1.bf16.msra.mxu0 %v946_v54 }
  0x5a   :  { %565 = vmatprep.subr.bf16.mxu0 %v948_v56 }
  0x5b   :  { %864 = vmatpush3.bf16.msra.mxu1 %v955_v58 }
  0x5c   :  { %865 = vmatprep.subr.bf16.mxu1 %v1062_v47 }
  0x5d   :  { %566 = vmatpush1.bf16.msra.mxu0 %v950_v57 }
  0x5e   :  { %567 = vmatprep.subr.bf16.mxu0 %v952_v59 }
  0x5f   :  { %866 = vmatpush3.bf16.msra.mxu1 %v959_v61 }
  0x60   :  { %867 = vmatprep.subr.bf16.mxu1 %v1062_v47 }
  0x61   :  { %568 = vmatpush1.bf16.msra.mxu0 %v954_v60 }
  0x62   :  { %569 = vmatprep.subr.bf16.mxu0 %v956_v62 }
  0x63   :  { %868 = vmatpush3.bf16.msra.mxu1 %v963_v1 }
  0x64   :  { %869 = vmatprep.subr.bf16.mxu1 %v1062_v47 }
  0x65   :  { %570 = vmatpush1.bf16.msra.mxu0 %v958_v0 }
  0x66   :  { %580 = vmatprep.subr.bf16.mxu0 %v962_v2 }
  0x67   :  { %870 = vmatpush3.bf16.msra.mxu1 %v967_v5 }
  0x68   :  { %572 = vmatmul.mubr.bf16.vlgmr.msra.gmra.mrb[0].mxu0 %v1130_v43 }
  0x69   :  { %581 = vmatpush1.bf16.msra.mxu0 %v960_v4  ;;  %612 = vmatprep.mubr.bf16.mxu0 %v1064_v10 }
  0x6a   :  { %582 = vmatprep.subr.bf16.mxu0 %v966_v6  ;;  %872 = vmatmul.mubr.bf16.vlgmr.msra.gmra.mrb[4].mxu1 %v58_v7 }
  0x6d   :  { %583 = vmatpush1.bf16.msra.mxu0 %v964_v8 }
  0x6e   :  { %584 = vmatprep.subr.bf16.mxu0 %v970_v9 }
  0x71   :  { %585 = vmatpush1.bf16.msra.mxu0 %v968_v11 }
  0x72   :  { %586 = vmatprep.subr.bf16.mxu0 %v973_v12 }
  0x75   :  { %587 = vmatpush1.bf16.msra.mxu0 %v971_v13 }
  0x76   :  { %588 = vmatprep.subr.bf16.mxu0 %v976_v14 }
  0x79   :  { %589 = vmatpush1.bf16.msra.mxu0 %v974_v15 }
  0x7a   :  { %590 = vmatprep.subr.bf16.mxu0 %v979_v16 }
  0x7d   :  { %591 = vmatpush1.bf16.msra.mxu0 %v977_v17 }
  0x7e   :  { %592 = vmatprep.subr.bf16.mxu0 %v982_v18 }
  0x81   :  { %593 = vmatpush1.bf16.msra.mxu0 %v980_v19 }
  0x82   :  { %594 = vmatprep.subr.bf16.mxu0 %v985_v20 }
  0x85   :  { %595 = vmatpush1.bf16.msra.mxu0 %v983_v22 }
  0x88   :  { %613 = vmatmul.mubr.bf16.vlgmr.msra.gmra.mrb[0].mxu0 %v58_v7 }
 0x11d   :  { %v840_v23 = vpop.f32.mrb[0].mxu1 }
 0x11e   :  { %v841_v24 = vpop.f32.mrb[1].mxu1 }
 0x11f   :  { %v842_v25 = vadd.f32 %v841_v24, %v840_v23  ;;  %v843_v27 = vpop.f32.mrb[2].mxu1 }
 0x120   :  { %v844_v28 = vpop.f32.mrb[3].mxu1 }
 0x121   :  { %v656_v29 = vadd.f32 %v842_v25, %v52_v3 }
 0x13d   :  { %v695_v30 = vpop.f32.mrb[4].mxu1 }
 0x13e   :  { %v696_v31 = vadd.f32 %v695_v30, %v656_v29  ;;  %v873_v32 = vpop.f32.mrb[5].mxu1 }
 0x13f   :  { %v698_v33 = vpop.f32.mrb[6].mxu1 }
 0x140   :  { %v874_v34 = vpop.f32.mrb[7].mxu1  ;;  %v703_v47 = vmax.f32 %v696_v31, 0.0 }
 0x142   :  { %v721_v51 = vrot.slane %v703_v47, %v713_v48 }
 0x15b   :  { %v614_v38 = vpop.f32.mrb[0].mxu0 }
 0x15c   :  { %v875_v41 = vadd.f32 %v614_v38, %v1124_v40  ;;  %v616_v42 = vpop.f32.mrb[1].mxu0 }
 0x15d   :  { %v876_v43 = vadd.f32 %v616_v42, %v1121_v39  ;;  %v618_v44 = vpop.f32.mrb[2].mxu0 }
 0x15e   :  { %v701_v45 = vmax.f32 %v875_v41, 0.0  ;;  %v619_v46 = vpop.f32.mrb[3].mxu0 }
 0x15f   :  { %v702_v49 = vmax.f32 %v876_v43, 0.0 }
 0x161   :  { %v707_v50 = vcombine.low %v701_v45, %v702_v49 }
 0x163   :  { %v714_v52 = vrot.slane %v707_v50, %v713_v48 }
 0x165   :  { %v722_v53 = vcombine.low %v714_v52, %v721_v51 }
 0x167   :  { %v729_v54 = vrot.slane %v722_v53, %v713_v48 }
 0x169   :  { %735 = vst.msk [vmem:[#allocation7] sm:$0x7] %vm733_vm1, %v729_v54 }
 0x16a   :  { %1041 = shalt.err (!%p1038_p6)
}
 0x16b   :  { %s1042_s12 = scalar_lea.hbm %s1154_s2, 48 }
 0x16c   :  { %p1043_p7 = scmp.ne.s32.totalorder %s1154_s2, %s1042_s12  ;;  %p1046_p8 = scmp.lt.u32.totalorder %s1042_s12, %s1154_s2 }
 0x16e   :  { %p1048_p9 = pnand %p1046_p8, %p1043_p7 }
 0x170   :  { %1051 = shalt.err (!%p1048_p9)
}
 0x171   :  { %745 = dma.vmem_to_hbm [thread:$0]  %s743_s7, 48, %s1154_s2, [#allocation4]  }
 0x172   :  { %1056 = dma.done.wait [#allocation4], 48  }
 0x173   :  { %1057 = vsyncadd [#allocation4], 4294967248 }
 0x174   :  { %749 = vsyncpa [#allocation3], 1 }
 0x175   :  { %750 = vsyncpa [#allocation6], 1 }
 0x176   :  { %751 = vsyncpa [#allocation4], 1 }

</bundles_post_ra>
